<compile_context>
chip_gen: v6e
topology: v6e:2x2x1
jax: 0.10.0
libtpu: 0.0.40
codegen_flags: <defaults>
</compile_context>

<pallas_src>
import functools
import math

import jax
import jax.numpy as jnp
import numpy as np
from jax import lax
from jax.experimental import pallas as pl
from jax.experimental.pallas import tpu as pltpu


def _round_up(x, m):
    return ((x + m - 1) // m) * m


def fc_ddp2_kernel(emb_ref, ker_ref, lab_ref, *refs,
                   scale, margin, mode, c_total, c_tile, c_padded, emit_logits):
    if emit_logits:
        (logits_ref, rowloss_ref, rowcorr_ref,
         m_scr, l_scr, tgt_scr, omax_scr, oidx_scr) = refs
    else:
        logits_ref = None
        (rowloss_ref, rowcorr_ref,
         m_scr, l_scr, tgt_scr, omax_scr, oidx_scr) = refs

    c = pl.program_id(1)
    nc = pl.num_programs(1)
    NEG = jnp.float32(-1e30)   # representable in bf16; used as mask / init value

    # ---- init per B-tile (first C-tile): reset streaming accumulators
    @pl.when(c == 0)
    def _init():
        m_scr[...] = jnp.full_like(m_scr, NEG)
        l_scr[...] = jnp.zeros_like(l_scr)
        tgt_scr[...] = jnp.zeros_like(tgt_scr)
        omax_scr[...] = jnp.full_like(omax_scr, NEG)
        oidx_scr[...] = jnp.zeros_like(oidx_scr)

    # ---- bf16 MXU matmul on pre-normalized operands (normalization folded in
    #      the XLA prologue), f32 accumulation.
    cos = jnp.dot(emb_ref[...], ker_ref[...], preferred_element_type=jnp.float32)
    cos = jnp.clip(cos, -1.0, 1.0)                                   # [Bt, Ct]

    lab = lab_ref[...]                                               # [Bt, 1] int32
    col = lax.broadcasted_iota(jnp.int32, cos.shape, 1) + c * c_tile
    onehot = col == lab                                              # label column

    # cos at the label column (one select + one row reduce; needed for margin)
    target = jnp.sum(jnp.where(onehot, cos, 0.0), axis=1, keepdims=True)
    if mode == 'cosface':
        target_m = target - margin
    elif mode == 'arcface':
        cos_m = math.cos(margin)
        sin_m = math.sin(margin)
        theta = math.cos(math.pi - margin)
        sinmm = math.sin(math.pi - margin) * margin
        sin_t = jnp.sqrt(jnp.maximum(1.0 - target * target, 0.0))
        target_m = jnp.where(target > theta,
                             target * cos_m - sin_t * sin_m,
                             target - sinmm)
    else:
        raise ValueError('Please check the mode')

    # label-column (margined, scaled) logit: per-row scalar accumulation —
    # label < C always, so no pad-mask needed; no second full-tile reduce.
    in_tile = (lab >= c * c_tile) & (lab < (c + 1) * c_tile)
    tgt_scr[...] += jnp.where(in_tile, target_m * scale, 0.0)

    def epilogue(masked):
        if masked:
            valid = col < c_total
            origin = jnp.where(valid, cos, NEG)
        else:
            origin = cos

        # top-1 accuracy on un-margined cos: streaming first-argmax
        # (exact equality vs t_max is fine: t_max is derived from origin itself)
        t_max = jnp.max(origin, axis=1, keepdims=True)
        t_idx = jnp.min(jnp.where(origin == t_max, col, jnp.int32(2 ** 30)),
                        axis=1, keepdims=True)
        take_new = t_max > omax_scr[...]
        oidx_scr[...] = jnp.where(take_new, t_idx, oidx_scr[...])
        omax_scr[...] = jnp.maximum(omax_scr[...], t_max)

        # margin scattered into the label column, then scaled
        logits = jnp.where(onehot, target_m, cos) * scale
        if masked:
            logits = jnp.where(valid, logits, NEG)
        if emit_logits:
            logits_ref[...] = logits.astype(logits_ref.dtype)        # bf16 write

        # online logsumexp over the margined logits
        t_lmax = jnp.max(logits, axis=1, keepdims=True)
        m_new = jnp.maximum(m_scr[...], t_lmax)
        l_scr[...] = (jnp.exp(m_scr[...] - m_new) * l_scr[...]
                      + jnp.sum(jnp.exp(logits - m_new), axis=1, keepdims=True))
        m_scr[...] = m_new

    if c_padded:
        # only the last C-tile ever contains padded columns
        @pl.when(c == nc - 1)
        def _masked():
            epilogue(True)

        @pl.when(c != nc - 1)
        def _unmasked():
            epilogue(False)
    else:
        epilogue(False)

    # ---- finalize per B-tile.  Padded B rows produce garbage loss / spurious
    #      "correct" hits; both are sliced to [:B] in the XLA epilogue.
    @pl.when(c == nc - 1)
    def _finalize():
        lse = m_scr[...] + jnp.log(l_scr[...])
        rowloss_ref[...] = lse - tgt_scr[...]
        rowcorr_ref[...] = (oidx_scr[...] == lab).astype(jnp.float32)


def _vmem_limit_bytes(B_tile, C_tile, D_pad, emit_logits):
    lane = 128  # (Bt,1) arrays are lane-padded to 128 in VMEM
    emb = B_tile * D_pad * 2
    ker = D_pad * C_tile * 2
    lab = B_tile * lane * 4
    logit = B_tile * C_tile * 2 if emit_logits else 0
    rows = 2 * B_tile * lane * 4
    scratch = 5 * B_tile * lane * 4
    working = 2 * (emb + ker + lab + logit + rows) + scratch   # double-buffered
    # cap at 48 MB: safe on v5e/v6e (128 MiB) and v7x (64 MiB physical VMEM)
    return int(min(max(working * 3 // 2, 32 * 1024 * 1024), 48 * 1024 * 1024))


@functools.partial(jax.jit,
                   static_argnames=("scale", "margin", "mode", "block_b",
                                    "block_c", "return_logits", "logits_dtype"))
def fc_ddp2_forward(embeddings, kernel, label, *, scale=64.0, margin=0.4,
                    mode='cosface', block_b=512, block_c=2048,
                    return_logits=True, logits_dtype=jnp.bfloat16):
    """Matches FC_ddp2.forward(embeddings, label, return_logits) with
    use_cifp=False, ddp=False.  Returns (loss, acc[, logits]); logits are
    emitted in bf16 by default (pass logits_dtype=jnp.float32 to override)."""
    B, D = embeddings.shape
    D2, C = kernel.shape
    assert D2 == D

    B_tile = min(block_b, _round_up(B, 8))
    C_tile = min(block_c, _round_up(C, 128))
    B_pad = _round_up(B, B_tile)
    C_pad = _round_up(C, C_tile)
    D_pad = _round_up(D, 128)
    nb, nc = B_pad // B_tile, C_pad // C_tile

    # XLA prologue: both L2 normalizations done once in f32, operands cast bf16.
    e32 = embeddings.astype(jnp.float32)
    e_n = (e32 * lax.rsqrt(jnp.sum(e32 * e32, axis=1, keepdims=True) + 1e-12)
           ).astype(jnp.bfloat16)
    k32 = kernel.astype(jnp.float32)
    k_n = (k32 * lax.rsqrt(jnp.sum(k32 * k32, axis=0, keepdims=True) + 1e-12)
           ).astype(jnp.bfloat16)

    emb_p = jnp.pad(e_n, ((0, B_pad - B), (0, D_pad - D)))
    ker_p = jnp.pad(k_n, ((0, D_pad - D), (0, C_pad - C)))
    lab_p = jnp.pad(label.astype(jnp.int32).reshape(B, 1), ((0, B_pad - B), (0, 0)))

    body = functools.partial(fc_ddp2_kernel, scale=float(scale), margin=float(margin),
                             mode=mode, c_total=C, c_tile=C_tile,
                             c_padded=(C_pad != C), emit_logits=return_logits)

    out_shapes = []
    out_specs = []
    if return_logits:
        out_shapes.append(jax.ShapeDtypeStruct((B_pad, C_pad), logits_dtype))
        out_specs.append(pl.BlockSpec((B_tile, C_tile), lambda b, c: (b, c)))
    out_shapes += [jax.ShapeDtypeStruct((B_pad, 1), jnp.float32),     # per-row loss
                   jax.ShapeDtypeStruct((B_pad, 1), jnp.float32)]     # per-row correct
    out_specs += [pl.BlockSpec((B_tile, 1), lambda b, c: (b, 0)),
                  pl.BlockSpec((B_tile, 1), lambda b, c: (b, 0))]

    results = pl.pallas_call(
        body,
        out_shape=tuple(out_shapes),
        grid_spec=pltpu.PrefetchScalarGridSpec(
            num_scalar_prefetch=0,
            grid=(nb, nc),
            in_specs=[
                pl.BlockSpec((B_tile, D_pad), lambda b, c: (b, 0)),   # emb (bf16, normed)
                pl.BlockSpec((D_pad, C_tile), lambda b, c: (0, c)),   # kernel (bf16, normed)
                pl.BlockSpec((B_tile, 1), lambda b, c: (b, 0)),       # labels
            ],
            out_specs=tuple(out_specs),
            scratch_shapes=[
                pltpu.VMEM((B_tile, 1), jnp.float32),   # running max (LSE)
                pltpu.VMEM((B_tile, 1), jnp.float32),   # running sum-exp
                pltpu.VMEM((B_tile, 1), jnp.float32),   # label logit
                pltpu.VMEM((B_tile, 1), jnp.float32),   # running origin max
                pltpu.VMEM((B_tile, 1), jnp.int32),     # running argmax
            ],
        ),
        compiler_params=pltpu.CompilerParams(
            dimension_semantics=("parallel", "arbitrary"),
            vmem_limit_bytes=_vmem_limit_bytes(B_tile, C_tile, D_pad, return_logits),
        ),
    )(emb_p, ker_p, lab_p)

    if return_logits:
        logits_p, rowloss, rowcorr = results
    else:
        rowloss, rowcorr = results

    loss = jnp.sum(rowloss[:B, 0]) / B
    acc = jnp.sum(rowcorr[:B, 0]) / B
    if return_logits:
        return loss, acc, logits_p[:B, :C]
    return loss, acc


# ---------------------------- references for testing ----------------------------

def _margin_ce_acc(cos, label, scale, margin, mode):
    B, C = cos.shape
    tgt = cos[jnp.arange(B), label][:, None]
    if mode == 'cosface':
        tgt_m = tgt - margin
    else:
        cos_m = math.cos(margin)
        sin_m = math.sin(margin)
        theta = math.cos(math.pi - margin)
        sinmm = math.sin(math.pi - margin) * margin
        sin_t = jnp.sqrt(jnp.maximum(1.0 - tgt * tgt, 0.0))
        tgt_m = jnp.where(tgt > theta, tgt * cos_m - sin_t * sin_m, tgt - sinmm)
    onehot = jax.nn.one_hot(label, C, dtype=cos.dtype)
    out = (cos * (1 - onehot) + tgt_m * onehot) * scale
    logz = jax.scipy.special.logsumexp(out, axis=1)
    loss = jnp.mean(logz - out[jnp.arange(B), label])
    acc = jnp.mean((jnp.argmax(cos * scale, axis=1) == label).astype(jnp.float32))
    return loss, acc, out


def _reference_f32(embeddings, kernel, label, scale, margin, mode):
    e = embeddings / jnp.linalg.norm(embeddings, axis=1, keepdims=True)
    k = kernel / jnp.linalg.norm(kernel, axis=0, keepdims=True)
    cos = jnp.clip(e @ k, -1.0, 1.0)
    return _margin_ce_acc(cos, label, scale, margin, mode)


def _reference_bf16path(embeddings, kernel, label, scale, margin, mode):
    """Same numeric path as the Pallas kernel (prologue-normalized bf16 operands)."""
    e32 = embeddings.astype(jnp.float32)
    e_n = (e32 * lax.rsqrt(jnp.sum(e32 * e32, axis=1, keepdims=True) + 1e-12)
           ).astype(jnp.bfloat16)
    k32 = kernel.astype(jnp.float32)
    k_n = (k32 * lax.rsqrt(jnp.sum(k32 * k32, axis=0, keepdims=True) + 1e-12)
           ).astype(jnp.bfloat16)
    cos = jnp.clip(jnp.dot(e_n, k_n, preferred_element_type=jnp.float32), -1.0, 1.0)
    return _margin_ce_acc(cos, label, scale, margin, mode)


if __name__ == "__main__":
    def make_inputs(batch, in_features, out_features, seed_offset):
        key = jax.random.fold_in(jax.random.PRNGKey(0), seed_offset)
        k_emb, k_ker, k_lab = jax.random.split(key, 3)
        embeddings = jax.random.normal(k_emb, (batch, in_features), dtype=jnp.float32)
        kernel = 0.01 * jax.random.normal(k_ker, (in_features, out_features),
                                          dtype=jnp.float32)   # nn.init.normal_(std=0.01)
        label = jax.random.randint(k_lab, (batch,), 0, out_features, dtype=jnp.int32)
        return embeddings, kernel, label

    def run_case(batch, in_features, out_features, mode, block_b, block_c, seed_offset):
        embeddings, kernel, label = make_inputs(batch, in_features, out_features,
                                                seed_offset)
        loss, acc, out = fc_ddp2_forward(embeddings, kernel, label, scale=64.0,
                                         margin=0.4, mode=mode,
                                         block_b=block_b, block_c=block_c,
                                         return_logits=True)
        jax.block_until_ready((loss, acc, out))
        out32 = np.asarray(out.astype(jnp.float32))

        # tight check vs a reference following the same bf16 numeric path
        bl, ba, bo = _reference_bf16path(embeddings, kernel, label, 64.0, 0.4, mode)
        assert np.allclose(out32, np.asarray(bo), atol=0.5), "logits (bf16 path)"
        assert np.allclose(np.asarray(loss), np.asarray(bl), atol=2e-2), "loss (bf16 path)"
        assert np.allclose(np.asarray(acc), np.asarray(ba), atol=1e-6), "acc (bf16 path)"

        # sanity check vs the full-f32 reference (bf16-MXU + bf16-output tolerance)
        rl, ra, ro = _reference_f32(embeddings, kernel, label, 64.0, 0.4, mode)
        assert np.allclose(out32, np.asarray(ro), atol=0.75), "logits (f32 ref)"
        assert np.allclose(np.asarray(loss), np.asarray(rl), atol=0.2), "loss (f32 ref)"
        assert abs(float(acc) - float(ra)) <= 1.0 / batch + 1e-6, "acc (f32 ref)"

    # single-tile case (grid 1x1), cosface
    run_case(batch=8, in_features=32, out_features=16, mode='cosface',
             block_b=512, block_c=2048, seed_offset=0)

    # multi-tile case with padding on every axis (grid 3x3), arcface:
    # exercises the streaming LSE / argmax / label-scatter and the masked
    # last-C-tile path across tiles.
    run_case(batch=20, in_features=40, out_features=300, mode='arcface',
             block_b=8, block_c=128, seed_offset=1)

    # return_logits=False variant (logits output / HBM stream dropped entirely)
    embeddings, kernel, label = make_inputs(8, 32, 16, 0)
    loss_nl, acc_nl = fc_ddp2_forward(embeddings, kernel, label, scale=64.0,
                                      margin=0.4, mode='cosface',
                                      block_b=512, block_c=2048,
                                      return_logits=False)
    jax.block_until_ready((loss_nl, acc_nl))
    bl, ba, _ = _reference_bf16path(embeddings, kernel, label, 64.0, 0.4, 'cosface')
    assert np.allclose(np.asarray(loss_nl), np.asarray(bl), atol=2e-2), "loss (no logits)"
    assert np.allclose(np.asarray(acc_nl), np.asarray(ba), atol=1e-6), "acc (no logits)"

    print("KERNEL_OK")
</pallas_src>

<mosaic_0001>
module attributes {stable_mosaic.version = 11 : i64} {
  func.func @fc_ddp2_kernel(%arg0: i32, %arg1: i32, %arg2: memref<8x128xbf16, #tpu.memory_space<vmem>>, %arg3: memref<128x128xbf16, #tpu.memory_space<vmem>>, %arg4: memref<8x1xi32, #tpu.memory_space<vmem>>, %arg5: memref<8x128xbf16, #tpu.memory_space<vmem>>, %arg6: memref<8x1xf32, #tpu.memory_space<vmem>>, %arg7: memref<8x1xf32, #tpu.memory_space<vmem>>, %arg8: memref<8x1xf32, #tpu.memory_space<vmem>>, %arg9: memref<8x1xf32, #tpu.memory_space<vmem>>, %arg10: memref<8x1xf32, #tpu.memory_space<vmem>>, %arg11: memref<8x1xf32, #tpu.memory_space<vmem>>, %arg12: memref<8x1xi32, #tpu.memory_space<vmem>>) attributes {dimension_semantics = [#tpu.dimension_semantics<parallel>, #tpu.dimension_semantics<arbitrary>], iteration_bounds = array<i64: 1, 1>, scalar_prefetch = 0 : i64, scratch_operands = 5 : i64, tpu.core_type = #tpu.core_type<tc>, window_params = [{transform_indices = @transform_0, window_bounds = array<i64: 8, 128>}, {transform_indices = @transform_1, window_bounds = array<i64: 128, 128>}, {transform_indices = @transform_2, window_bounds = array<i64: 8, 1>}, {transform_indices = @transform_3, window_bounds = array<i64: 8, 128>}, {transform_indices = @transform_4, window_bounds = array<i64: 8, 1>}, {transform_indices = @transform_5, window_bounds = array<i64: 8, 1>}]} {
    %c0_i32 = arith.constant 0 : i32
    %0 = arith.cmpi eq, %arg1, %c0_i32 : i32
    %1 = arith.extui %0 : i1 to i32
    %cst = arith.constant -1.000000e+30 : f32
    %c0_i32_0 = arith.constant 0 : i32
    %2 = arith.cmpi ne, %1, %c0_i32_0 : i32
    scf.if %2 {
      %47 = vector.broadcast %cst : f32 to vector<8x1xf32>
      %c0_27 = arith.constant 0 : index
      %c0_28 = arith.constant 0 : index
      %48 = vector.load %arg8[%c0_27, %c0_28] : memref<8x1xf32, #tpu.memory_space<vmem>>, vector<8x1xf32>
      tpu.vector_store %arg8[%c0_27, %c0_28], %47 {strides = array<i32>} : memref<8x1xf32, #tpu.memory_space<vmem>>, vector<8x1xf32>,
      %cst_29 = arith.constant 0.000000e+00 : f32
      %49 = vector.broadcast %cst_29 : f32 to vector<8x1xf32>
      %c0_30 = arith.constant 0 : index
      %c0_31 = arith.constant 0 : index
      %50 = vector.load %arg9[%c0_30, %c0_31] : memref<8x1xf32, #tpu.memory_space<vmem>>, vector<8x1xf32>
      tpu.vector_store %arg9[%c0_30, %c0_31], %49 {strides = array<i32>} : memref<8x1xf32, #tpu.memory_space<vmem>>, vector<8x1xf32>,
      %cst_32 = arith.constant 0.000000e+00 : f32
      %51 = vector.broadcast %cst_32 : f32 to vector<8x1xf32>
      %c0_33 = arith.constant 0 : index
      %c0_34 = arith.constant 0 : index
      %52 = vector.load %arg10[%c0_33, %c0_34] : memref<8x1xf32, #tpu.memory_space<vmem>>, vector<8x1xf32>
      tpu.vector_store %arg10[%c0_33, %c0_34], %51 {strides = array<i32>} : memref<8x1xf32, #tpu.memory_space<vmem>>, vector<8x1xf32>,
      %53 = vector.broadcast %cst : f32 to vector<8x1xf32>
      %c0_35 = arith.constant 0 : index
      %c0_36 = arith.constant 0 : index
      %54 = vector.load %arg11[%c0_35, %c0_36] : memref<8x1xf32, #tpu.memory_space<vmem>>, vector<8x1xf32>
      tpu.vector_store %arg11[%c0_35, %c0_36], %53 {strides = array<i32>} : memref<8x1xf32, #tpu.memory_space<vmem>>, vector<8x1xf32>,
      %c0_i32_37 = arith.constant 0 : i32
      %55 = vector.broadcast %c0_i32_37 : i32 to vector<8x1xi32>
      %c0_38 = arith.constant 0 : index
      %c0_39 = arith.constant 0 : index
      %56 = vector.load %arg12[%c0_38, %c0_39] : memref<8x1xi32, #tpu.memory_space<vmem>>, vector<8x1xi32>
      tpu.vector_store %arg12[%c0_38, %c0_39], %55 {strides = array<i32>} : memref<8x1xi32, #tpu.memory_space<vmem>>, vector<8x1xi32>,
    } else {
    }
    %c0 = arith.constant 0 : index
    %c0_1 = arith.constant 0 : index
    %3 = vector.load %arg2[%c0, %c0_1] : memref<8x128xbf16, #tpu.memory_space<vmem>>, vector<8x128xbf16>
    %c0_2 = arith.constant 0 : index
    %c0_3 = arith.constant 0 : index
    %4 = vector.load %arg3[%c0_2, %c0_3] : memref<128x128xbf16, #tpu.memory_space<vmem>>, vector<128x128xbf16>
    %cst_4 = arith.constant dense<0.000000e+00> : vector<8x128xf32>
    %5 = tpu.matmul %3, %4, %cst_4 {dimension_numbers = #tpu.dot_dimension_numbers<[1], [0], [0], [1], [0, 0, 1, 1], [], []>} : vector<8x128xbf16>, vector<128x128xbf16>, vector<8x128xf32> -> vector<8x128xf32>
    %cst_5 = arith.constant -1.000000e+00 : f32
    %cst_6 = arith.constant 1.000000e+00 : f32
    %6 = vector.broadcast %cst_5 : f32 to vector<8x128xf32>
    %7 = arith.maximumf %6, %5 : vector<8x128xf32>
    %8 = vector.broadcast %cst_6 : f32 to vector<8x128xf32>
    %9 = arith.minimumf %8, %7 : vector<8x128xf32>
    %c0_7 = arith.constant 0 : index
    %c0_8 = arith.constant 0 : index
    %10 = vector.load %arg4[%c0_7, %c0_8] : memref<8x1xi32, #tpu.memory_space<vmem>>, vector<8x1xi32>
    %11 = tpu.iota {dimensions = array<i32: 1>} : vector<8x128xi32>
    %c128_i32 = arith.constant 128 : i32
    %12 = arith.muli %arg1, %c128_i32 : i32
    %13 = vector.broadcast %12 : i32 to vector<8x128xi32>
    %14 = arith.addi %11, %13 : vector<8x128xi32>
    %15 = vector.broadcast %10 : vector<8x1xi32> to vector<8x128xi32>
    %16 = arith.cmpi eq, %14, %15 : vector<8x128xi32>
    %cst_9 = arith.constant 0.000000e+00 : f32
    %17 = vector.broadcast %cst_9 : f32 to vector<8x128xf32>
    %18 = arith.select %16, %9, %17 : vector<8x128xi1>, vector<8x128xf32>
    %cst_10 = arith.constant dense<0.000000e+00> : vector<8xf32>
    %19 = vector.multi_reduction <add>, %18, %cst_10 [1] : vector<8x128xf32> to vector<8xf32>
    %20 = vector.shape_cast %19 : vector<8xf32> to vector<8x1xf32>
    %cst_11 = arith.constant 4.000000e-01 : f32
    %21 = vector.broadcast %cst_11 : f32 to vector<8x1xf32>
    %22 = arith.subf %20, %21 : vector<8x1xf32>
    %c128_i32_12 = arith.constant 128 : i32
    %23 = arith.muli %arg1, %c128_i32_12 : i32
    %24 = vector.broadcast %23 : i32 to vector<8x1xi32>
    %25 = arith.cmpi sge, %10, %24 : vector<8x1xi32>
    %c1_i32 = arith.constant 1 : i32
    %26 = arith.addi %arg1, %c1_i32 : i32
    %c128_i32_13 = arith.constant 128 : i32
    %27 = arith.muli %26, %c128_i32_13 : i32
    %28 = vector.broadcast %27 : i32 to vector<8x1xi32>
    %29 = arith.cmpi slt, %10, %28 : vector<8x1xi32>
    %30 = arith.andi %25, %29 : vector<8x1xi1>
    %c0_14 = arith.constant 0 : index
    %c0_15 = arith.constant 0 : index
    %31 = vector.load %arg10[%c0_14, %c0_15] : memref<8x1xf32, #tpu.memory_space<vmem>>, vector<8x1xf32>
    %cst_16 = arith.constant 6.400000e+01 : f32
    %32 = vector.broadcast %cst_16 : f32 to vector<8x1xf32>
    %33 = arith.mulf %22, %32 : vector<8x1xf32>
    %cst_17 = arith.constant 0.000000e+00 : f32
    %34 = vector.broadcast %cst_17 : f32 to vector<8x1xf32>
    %35 = arith.select %30, %33, %34 : vector<8x1xi1>, vector<8x1xf32>
    %36 = arith.addf %31, %35 : vector<8x1xf32>
    %c0_18 = arith.constant 0 : index
    %c0_19 = arith.constant 0 : index
    %37 = vector.load %arg10[%c0_18, %c0_19] : memref<8x1xf32, #tpu.memory_space<vmem>>, vector<8x1xf32>
    tpu.vector_store %arg10[%c0_18, %c0_19], %36 {strides = array<i32>} : memref<8x1xf32, #tpu.memory_space<vmem>>, vector<8x1xf32>,
    %c0_i32_20 = arith.constant 0 : i32
    %38 = arith.cmpi eq, %arg1, %c0_i32_20 : i32
    %39 = arith.extui %38 : i1 to i32
    %cst_21 = arith.constant -1.000000e+30 : f32
    %c0_i32_22 = arith.constant 0 : i32
    %40 = arith.cmpi ne, %39, %c0_i32_22 : i32
    scf.if %40 {
      %c16_i32 = arith.constant 16 : i32
      %47 = vector.broadcast %c16_i32 : i32 to vector<8x128xi32>
      %48 = arith.cmpi slt, %14, %47 : vector<8x128xi32>
      %49 = vector.broadcast %cst_21 : f32 to vector<8x128xf32>
      %50 = arith.select %48, %9, %49 : vector<8x128xi1>, vector<8x128xf32>
      %cst_27 = arith.constant dense<0xFF800000> : vector<8xf32>
      %51 = vector.multi_reduction <maximumf>, %50, %cst_27 [1] : vector<8x128xf32> to vector<8xf32>
      %52 = vector.shape_cast %51 : vector<8xf32> to vector<8x1xf32>
      %53 = vector.broadcast %52 : vector<8x1xf32> to vector<8x128xf32>
      %54 = arith.cmpf oeq, %50, %53 : vector<8x128xf32>
      %c1073741824_i32 = arith.constant 1073741824 : i32
      %55 = vector.broadcast %c1073741824_i32 : i32 to vector<8x128xi32>
      %56 = arith.select %54, %14, %55 : vector<8x128xi1>, vector<8x128xi32>
      %cst_28 = arith.constant dense<2147483647> : vector<8xi32>
      %57 = vector.multi_reduction <minsi>, %56, %cst_28 [1] : vector<8x128xi32> to vector<8xi32>
      %58 = vector.shape_cast %57 : vector<8xi32> to vector<8x1xi32>
      %c0_29 = arith.constant 0 : index
      %c0_30 = arith.constant 0 : index
      %59 = vector.load %arg11[%c0_29, %c0_30] : memref<8x1xf32, #tpu.memory_space<vmem>>, vector<8x1xf32>
      %60 = arith.cmpf ogt, %52, %59 : vector<8x1xf32>
      %c0_31 = arith.constant 0 : index
      %c0_32 = arith.constant 0 : index
      %61 = vector.load %arg12[%c0_31, %c0_32] : memref<8x1xi32, #tpu.memory_space<vmem>>, vector<8x1xi32>
      %62 = arith.select %60, %58, %61 : vector<8x1xi1>, vector<8x1xi32>
      %c0_33 = arith.constant 0 : index
      %c0_34 = arith.constant 0 : index
      %63 = vector.load %arg12[%c0_33, %c0_34] : memref<8x1xi32, #tpu.memory_space<vmem>>, vector<8x1xi32>
      tpu.vector_store %arg12[%c0_33, %c0_34], %62 {strides = array<i32>} : memref<8x1xi32, #tpu.memory_space<vmem>>, vector<8x1xi32>,
      %c0_35 = arith.constant 0 : index
      %c0_36 = arith.constant 0 : index
      %64 = vector.load %arg11[%c0_35, %c0_36] : memref<8x1xf32, #tpu.memory_space<vmem>>, vector<8x1xf32>
      %65 = arith.maximumf %64, %52 : vector<8x1xf32>
      %c0_37 = arith.constant 0 : index
      %c0_38 = arith.constant 0 : index
      %66 = vector.load %arg11[%c0_37, %c0_38] : memref<8x1xf32, #tpu.memory_space<vmem>>, vector<8x1xf32>
      tpu.vector_store %arg11[%c0_37, %c0_38], %65 {strides = array<i32>} : memref<8x1xf32, #tpu.memory_space<vmem>>, vector<8x1xf32>,
      %67 = vector.shape_cast %22 : vector<8x1xf32> to vector<8x1xf32>
      %68 = vector.broadcast %67 : vector<8x1xf32> to vector<8x128xf32>
      %69 = arith.select %16, %68, %9 : vector<8x128xi1>, vector<8x128xf32>
      %cst_39 = arith.constant 6.400000e+01 : f32
      %70 = vector.broadcast %cst_39 : f32 to vector<8x128xf32>
      %71 = arith.mulf %69, %70 : vector<8x128xf32>
      %72 = vector.broadcast %cst_21 : f32 to vector<8x128xf32>
      %73 = arith.select %48, %71, %72 : vector<8x128xi1>, vector<8x128xf32>
      %74 = arith.truncf %73 : vector<8x128xf32> to vector<8x128xbf16>
      %c0_40 = arith.constant 0 : index
      %c0_41 = arith.constant 0 : index
      %75 = vector.load %arg5[%c0_40, %c0_41] : memref<8x128xbf16, #tpu.memory_space<vmem>>, vector<8x128xbf16>
      tpu.vector_store %arg5[%c0_40, %c0_41], %74 {strides = array<i32>} : memref<8x128xbf16, #tpu.memory_space<vmem>>, vector<8x128xbf16>,
      %cst_42 = arith.constant dense<0xFF800000> : vector<8xf32>
      %76 = vector.multi_reduction <maximumf>, %73, %cst_42 [1] : vector<8x128xf32> to vector<8xf32>
      %77 = vector.shape_cast %76 : vector<8xf32> to vector<8x1xf32>
      %c0_43 = arith.constant 0 : index
      %c0_44 = arith.constant 0 : index
      %78 = vector.load %arg8[%c0_43, %c0_44] : memref<8x1xf32, #tpu.memory_space<vmem>>, vector<8x1xf32>
      %79 = arith.maximumf %78, %77 : vector<8x1xf32>
      %c0_45 = arith.constant 0 : index
      %c0_46 = arith.constant 0 : index
      %80 = vector.load %arg8[%c0_45, %c0_46] : memref<8x1xf32, #tpu.memory_space<vmem>>, vector<8x1xf32>
      %81 = arith.subf %80, %79 : vector<8x1xf32>
      %82 = math.exp %81 : vector<8x1xf32>
      %c0_47 = arith.constant 0 : index
      %c0_48 = arith.constant 0 : index
      %83 = vector.load %arg9[%c0_47, %c0_48] : memref<8x1xf32, #tpu.memory_space<vmem>>, vector<8x1xf32>
      %84 = arith.mulf %82, %83 : vector<8x1xf32>
      %85 = vector.broadcast %79 : vector<8x1xf32> to vector<8x128xf32>
      %86 = arith.subf %73, %85 : vector<8x128xf32>
      %87 = math.exp %86 : vector<8x128xf32>
      %cst_49 = arith.constant dense<0.000000e+00> : vector<8xf32>
      %88 = vector.multi_reduction <add>, %87, %cst_49 [1] : vector<8x128xf32> to vector<8xf32>
      %89 = vector.shape_cast %88 : vector<8xf32> to vector<8x1xf32>
      %90 = arith.addf %84, %89 : vector<8x1xf32>
      %c0_50 = arith.constant 0 : index
      %c0_51 = arith.constant 0 : index
      %91 = vector.load %arg9[%c0_50, %c0_51] : memref<8x1xf32, #tpu.memory_space<vmem>>, vector<8x1xf32>
      tpu.vector_store %arg9[%c0_50, %c0_51], %90 {strides = array<i32>} : memref<8x1xf32, #tpu.memory_space<vmem>>, vector<8x1xf32>,
      %c0_52 = arith.constant 0 : index
      %c0_53 = arith.constant 0 : index
      %92 = vector.load %arg8[%c0_52, %c0_53] : memref<8x1xf32, #tpu.memory_space<vmem>>, vector<8x1xf32>
      tpu.vector_store %arg8[%c0_52, %c0_53], %79 {strides = array<i32>} : memref<8x1xf32, #tpu.memory_space<vmem>>, vector<8x1xf32>,
    } else {
    }
    %c0_i32_23 = arith.constant 0 : i32
    %41 = arith.cmpi ne, %arg1, %c0_i32_23 : i32
    %42 = arith.extui %41 : i1 to i32
    %c0_i32_24 = arith.constant 0 : i32
    %43 = arith.cmpi ne, %42, %c0_i32_24 : i32
    scf.if %43 {
      %cst_27 = arith.constant dense<0xFF800000> : vector<8xf32>
      %47 = vector.multi_reduction <maximumf>, %9, %cst_27 [1] : vector<8x128xf32> to vector<8xf32>
      %48 = vector.shape_cast %47 : vector<8xf32> to vector<8x1xf32>
      %49 = vector.broadcast %48 : vector<8x1xf32> to vector<8x128xf32>
      %50 = arith.cmpf oeq, %9, %49 : vector<8x128xf32>
      %c1073741824_i32 = arith.constant 1073741824 : i32
      %51 = vector.broadcast %c1073741824_i32 : i32 to vector<8x128xi32>
      %52 = arith.select %50, %14, %51 : vector<8x128xi1>, vector<8x128xi32>
      %cst_28 = arith.constant dense<2147483647> : vector<8xi32>
      %53 = vector.multi_reduction <minsi>, %52, %cst_28 [1] : vector<8x128xi32> to vector<8xi32>
      %54 = vector.shape_cast %53 : vector<8xi32> to vector<8x1xi32>
      %c0_29 = arith.constant 0 : index
      %c0_30 = arith.constant 0 : index
      %55 = vector.load %arg11[%c0_29, %c0_30] : memref<8x1xf32, #tpu.memory_space<vmem>>, vector<8x1xf32>
      %56 = arith.cmpf ogt, %48, %55 : vector<8x1xf32>
      %c0_31 = arith.constant 0 : index
      %c0_32 = arith.constant 0 : index
      %57 = vector.load %arg12[%c0_31, %c0_32] : memref<8x1xi32, #tpu.memory_space<vmem>>, vector<8x1xi32>
      %58 = arith.select %56, %54, %57 : vector<8x1xi1>, vector<8x1xi32>
      %c0_33 = arith.constant 0 : index
      %c0_34 = arith.constant 0 : index
      %59 = vector.load %arg12[%c0_33, %c0_34] : memref<8x1xi32, #tpu.memory_space<vmem>>, vector<8x1xi32>
      tpu.vector_store %arg12[%c0_33, %c0_34], %58 {strides = array<i32>} : memref<8x1xi32, #tpu.memory_space<vmem>>, vector<8x1xi32>,
      %c0_35 = arith.constant 0 : index
      %c0_36 = arith.constant 0 : index
      %60 = vector.load %arg11[%c0_35, %c0_36] : memref<8x1xf32, #tpu.memory_space<vmem>>, vector<8x1xf32>
      %61 = arith.maximumf %60, %48 : vector<8x1xf32>
      %c0_37 = arith.constant 0 : index
      %c0_38 = arith.constant 0 : index
      %62 = vector.load %arg11[%c0_37, %c0_38] : memref<8x1xf32, #tpu.memory_space<vmem>>, vector<8x1xf32>
      tpu.vector_store %arg11[%c0_37, %c0_38], %61 {strides = array<i32>} : memref<8x1xf32, #tpu.memory_space<vmem>>, vector<8x1xf32>,
      %63 = vector.shape_cast %22 : vector<8x1xf32> to vector<8x1xf32>
      %64 = vector.broadcast %63 : vector<8x1xf32> to vector<8x128xf32>
      %65 = arith.select %16, %64, %9 : vector<8x128xi1>, vector<8x128xf32>
      %cst_39 = arith.constant 6.400000e+01 : f32
      %66 = vector.broadcast %cst_39 : f32 to vector<8x128xf32>
      %67 = arith.mulf %65, %66 : vector<8x128xf32>
      %68 = arith.truncf %67 : vector<8x128xf32> to vector<8x128xbf16>
      %c0_40 = arith.constant 0 : index
      %c0_41 = arith.constant 0 : index
      %69 = vector.load %arg5[%c0_40, %c0_41] : memref<8x128xbf16, #tpu.memory_space<vmem>>, vector<8x128xbf16>
      tpu.vector_store %arg5[%c0_40, %c0_41], %68 {strides = array<i32>} : memref<8x128xbf16, #tpu.memory_space<vmem>>, vector<8x128xbf16>,
      %cst_42 = arith.constant dense<0xFF800000> : vector<8xf32>
      %70 = vector.multi_reduction <maximumf>, %67, %cst_42 [1] : vector<8x128xf32> to vector<8xf32>
      %71 = vector.shape_cast %70 : vector<8xf32> to vector<8x1xf32>
      %c0_43 = arith.constant 0 : index
      %c0_44 = arith.constant 0 : index
      %72 = vector.load %arg8[%c0_43, %c0_44] : memref<8x1xf32, #tpu.memory_space<vmem>>, vector<8x1xf32>
      %73 = arith.maximumf %72, %71 : vector<8x1xf32>
      %c0_45 = arith.constant 0 : index
      %c0_46 = arith.constant 0 : index
      %74 = vector.load %arg8[%c0_45, %c0_46] : memref<8x1xf32, #tpu.memory_space<vmem>>, vector<8x1xf32>
      %75 = arith.subf %74, %73 : vector<8x1xf32>
      %76 = math.exp %75 : vector<8x1xf32>
      %c0_47 = arith.constant 0 : index
      %c0_48 = arith.constant 0 : index
      %77 = vector.load %arg9[%c0_47, %c0_48] : memref<8x1xf32, #tpu.memory_space<vmem>>, vector<8x1xf32>
      %78 = arith.mulf %76, %77 : vector<8x1xf32>
      %79 = vector.broadcast %73 : vector<8x1xf32> to vector<8x128xf32>
      %80 = arith.subf %67, %79 : vector<8x128xf32>
      %81 = math.exp %80 : vector<8x128xf32>
      %cst_49 = arith.constant dense<0.000000e+00> : vector<8xf32>
      %82 = vector.multi_reduction <add>, %81, %cst_49 [1] : vector<8x128xf32> to vector<8xf32>
      %83 = vector.shape_cast %82 : vector<8xf32> to vector<8x1xf32>
      %84 = arith.addf %78, %83 : vector<8x1xf32>
      %c0_50 = arith.constant 0 : index
      %c0_51 = arith.constant 0 : index
      %85 = vector.load %arg9[%c0_50, %c0_51] : memref<8x1xf32, #tpu.memory_space<vmem>>, vector<8x1xf32>
      tpu.vector_store %arg9[%c0_50, %c0_51], %84 {strides = array<i32>} : memref<8x1xf32, #tpu.memory_space<vmem>>, vector<8x1xf32>,
      %c0_52 = arith.constant 0 : index
      %c0_53 = arith.constant 0 : index
      %86 = vector.load %arg8[%c0_52, %c0_53] : memref<8x1xf32, #tpu.memory_space<vmem>>, vector<8x1xf32>
      tpu.vector_store %arg8[%c0_52, %c0_53], %73 {strides = array<i32>} : memref<8x1xf32, #tpu.memory_space<vmem>>, vector<8x1xf32>,
    } else {
    }
    %c0_i32_25 = arith.constant 0 : i32
    %44 = arith.cmpi eq, %arg1, %c0_i32_25 : i32
    %45 = arith.extui %44 : i1 to i32
    %c0_i32_26 = arith.constant 0 : i32
    %46 = arith.cmpi ne, %45, %c0_i32_26 : i32
    scf.if %46 {
      %c0_27 = arith.constant 0 : index
      %c0_28 = arith.constant 0 : index
      %47 = vector.load %arg8[%c0_27, %c0_28] : memref<8x1xf32, #tpu.memory_space<vmem>>, vector<8x1xf32>
      %c0_29 = arith.constant 0 : index
      %c0_30 = arith.constant 0 : index
      %48 = vector.load %arg9[%c0_29, %c0_30] : memref<8x1xf32, #tpu.memory_space<vmem>>, vector<8x1xf32>
      %49 = math.log %48 : vector<8x1xf32>
      %50 = arith.addf %47, %49 : vector<8x1xf32>
      %c0_31 = arith.constant 0 : index
      %c0_32 = arith.constant 0 : index
      %51 = vector.load %arg10[%c0_31, %c0_32] : memref<8x1xf32, #tpu.memory_space<vmem>>, vector<8x1xf32>
      %52 = arith.subf %50, %51 : vector<8x1xf32>
      %c0_33 = arith.constant 0 : index
      %c0_34 = arith.constant 0 : index
      %53 = vector.load %arg6[%c0_33, %c0_34] : memref<8x1xf32, #tpu.memory_space<vmem>>, vector<8x1xf32>
      tpu.vector_store %arg6[%c0_33, %c0_34], %52 {strides = array<i32>} : memref<8x1xf32, #tpu.memory_space<vmem>>, vector<8x1xf32>,
      %c0_35 = arith.constant 0 : index
      %c0_36 = arith.constant 0 : index
      %54 = vector.load %arg12[%c0_35, %c0_36] : memref<8x1xi32, #tpu.memory_space<vmem>>, vector<8x1xi32>
      %55 = arith.cmpi eq, %54, %10 : vector<8x1xi32>
      %56 = arith.extui %55 : vector<8x1xi1> to vector<8x1xi32>
      %57 = arith.sitofp %56 : vector<8x1xi32> to vector<8x1xf32>
      %c0_37 = arith.constant 0 : index
      %c0_38 = arith.constant 0 : index
      %58 = vector.load %arg7[%c0_37, %c0_38] : memref<8x1xf32, #tpu.memory_space<vmem>>, vector<8x1xf32>
      tpu.vector_store %arg7[%c0_37, %c0_38], %57 {strides = array<i32>} : memref<8x1xf32, #tpu.memory_space<vmem>>, vector<8x1xf32>,
    } else {
    }
    return
  }
  func.func @transform_0(%arg0: i32, %arg1: i32) -> (i32, i32) {
    %c0_i32 = arith.constant 0 : i32
    %c0_i32_0 = arith.constant 0 : i32
    return %arg0, %c0_i32 : i32, i32
  }
  func.func @transform_1(%arg0: i32, %arg1: i32) -> (i32, i32) {
    %c0_i32 = arith.constant 0 : i32
    %c0_i32_0 = arith.constant 0 : i32
    return %c0_i32, %arg1 : i32, i32
  }
  func.func @transform_2(%arg0: i32, %arg1: i32) -> (i32, i32) {
    %c0_i32 = arith.constant 0 : i32
    %c0_i32_0 = arith.constant 0 : i32
    return %arg0, %c0_i32 : i32, i32
  }
  func.func @transform_3(%arg0: i32, %arg1: i32) -> (i32, i32) {
    %c0_i32 = arith.constant 0 : i32
    return %arg0, %arg1 : i32, i32
  }
  func.func @transform_4(%arg0: i32, %arg1: i32) -> (i32, i32) {
    %c0_i32 = arith.constant 0 : i32
    %c0_i32_0 = arith.constant 0 : i32
    return %arg0, %c0_i32 : i32, i32
  }
  func.func @transform_5(%arg0: i32, %arg1: i32) -> (i32, i32) {
    %c0_i32 = arith.constant 0 : i32
    %c0_i32_0 = arith.constant 0 : i32
    return %arg0, %c0_i32 : i32, i32
  }
}

</mosaic_0001>

<bundles_post_ra>
// kernel: fc_ddp2_forward.1
= control target key start
LH: loop header
LB: loop body
LE: loop exit
PB: predicated region body
PF: predicated region fallthrough
CT: control target
= control target key end

     0   :  { %v397_v1 = vmov 0.0   ;;  %vm398_vm0 = vmmov 0   ;;  %v399_v3 = vmov 0   ;;  %vm23_vm1 = vcmask 7168   ;;  %s501_s0 = inlined_call_operand.vmem [shape: bf16[8,128], index: 0, kind: input, shape index: {}]   ;;  %s502_s1 = inlined_call_operand.vmem [shape: bf16[128,128], index: 1, kind: input, shape index: {}]   ;;  %s503_s2 = inlined_call_operand.vmem [shape: s32[8,1], index: 2, kind: input, shape index: {}]   ;;  %s504_s3 = inlined_call_operand.hbm [shape: bf16[8,128], index: 3, kind: output, shape index: {0}]   ;;  %s505_s4 = inlined_call_operand.vmem [shape: f32[8,1], index: 4, kind: output, shape index: {1}]   ;;  %s506_s5 = inlined_call_operand.vmem [shape: f32[8,1], index: 5, kind: output, shape index: {2}]  }
   0x1   :  { %v361_v0 = vld [vmem:[%s502_s1 + $0x38] sm:$0xff]   ;;  %334 = vmatprep.subr.bf16.mxu0 %v397_v1  ;;  %v362_v2 = vld [vmem:[%s502_s1 + $0x30] sm:$0xff]   ;;  %350 = vmatprep.mubr.msk.bf16.mxu0 %vm398_vm0, %v397_v1  ;;  %28 = vst.msk [vmem:[#allocation6] sm:$0xff] %vm23_vm1, %v399_v3  ;;  %25 = vst.msk [vmem:[#allocation3] sm:$0xff] %vm23_vm1, %v397_v1 }
   0x2   :  { %335 = vmatpush3.bf16.msra.mxu0 %v361_v0  ;;  %359 = vset.pattern.permute.xlu0 %v399_v3  ;;  %26 = vst.msk [vmem:[#allocation4] sm:$0xff] %vm23_vm1, %v397_v1  ;;  %v363_v4 = vld [vmem:[%s502_s1 + $0x28] sm:$0xff]   ;;  %v453_v5 = vld [vmem:[%s503_s2] sm:$0xff] }
   0x3   :  { %336 = vmatprep.subr.bf16.mxu0 %v397_v1  ;;  %360 = vset.pattern.permute.xlu1 %v399_v3 }
   0x6   :  { %337 = vmatpush3.bf16.msra.mxu0 %v362_v2 }
   0x7   :  { %338 = vmatprep.subr.bf16.mxu0 %v397_v1 }
   0x8   :  { %11 = vsyncpa [#allocation8], 0  ;;  %143 = vperm.xlu0 %359, %v453_v5   ;;  %v364_v6 = vld [vmem:[%s502_s1 + $0x20] sm:$0xff]   ;;  %v365_v7 = vld [vmem:[%s502_s1 + $0x18] sm:$0xff]   ;;  %v137_v12 = vlaneseq  ;;  %vm150_vm3 = vcmp.ge.s32.totalorder %v453_v5, 0  ;;  %vm154_vm4 = vcmp.lt.s32.totalorder %v453_v5, 128 }
   0x9   :  { %v366_v8 = vld [vmem:[%s502_s1 + $0x10] sm:$0xff]   ;;  %v367_v9 = vld [vmem:[%s502_s1 + $0x8] sm:$0xff]   ;;  %v368_v10 = vld [vmem:[%s502_s1] sm:$0xff]   ;;  %v400_v31 = vmov -1e+30  }
   0xa   :  { %339 = vmatpush3.bf16.msra.mxu0 %v363_v4  ;;  %v29_v11 = vld [vmem:[%s501_s0] sm:$0xf]  ;;  %v138_v13 = vand.u32 127, %v137_v12  ;;  %vm155_vm5 = vmand %vm150_vm3, %vm154_vm4  ;;  %v156_v23 = vld [vmem:[#allocation4] sm:$0xff]  ;;  %24 = vst.msk [vmem:[#allocation2] sm:$0xff] %vm23_vm1, %v400_v31  ;;  %s401_s0 = smov [#allocation7]  }
   0xb   :  { %340 = vmatprep.subr.bf16.mxu0 %v397_v1  ;;  %27 = vst.msk [vmem:[#allocation5] sm:$0xff] %vm23_vm1, %v400_v31  ;;  %s298_s1 = sshll.u32 %s401_s0, 4  ;;  %s299_s1 = int_to_ptr.vmem [resolvable:$true] %s298_s1 }
   0xc   :  { %vm165_vm6 = vcmp.lt.s32.totalorder %v138_v13, 16  ;;  %s375_s12 = scalar_lea.vmem %s299_s1, 64  ;;  %p380_p1 = scmp.lt.s32.totalorder %s299_s1, %s299_s1 }
   0xd   :  { %p376_p0 = scmp.ne.s32.totalorder %s299_s1, %s375_s12  ;;  %p381_p2 = scmp.lt.s32.totalorder %s375_s12, %s375_s12 }
   0xe   :  { %341 = vmatpush3.bf16.msra.mxu0 %v364_v6 }
   0xf   :  { %342 = vmatprep.subr.bf16.mxu0 %v397_v1  ;;  %p382_p3 = por %p381_p2, %p380_p1 }
  0x11   :  { %v200_v33 = vld [vmem:[#allocation2] sm:$0xff]  ;;  %p383_p4 = pnand %p382_p3, %p376_p0 }
  0x12   :  { %343 = vmatpush3.bf16.msra.mxu0 %v365_v7  ;;  %v185_v36 = vld [vmem:[#allocation5] sm:$0xff] }
  0x13   :  { %344 = vmatprep.subr.bf16.mxu0 %v397_v1 }
  0x16   :  { %345 = vmatpush3.bf16.msra.mxu0 %v366_v8 }
  0x17   :  { %346 = vmatprep.subr.bf16.mxu0 %v397_v1 }
  0x1a   :  { %347 = vmatpush3.bf16.msra.mxu0 %v367_v9 }
  0x1b   :  { %348 = vmatprep.subr.bf16.mxu0 %v397_v1 }
  0x1e   :  { %349 = vmatpush3.bf16.msra.mxu0 %v368_v10 }
  0x21   :  { %351 = vmatmul.mubr.bf16.vlgmr.msra.gmra.mxu0 %v29_v11 }
  0x83   :  { %v144_v14 = vpop.permute.xlu0 %143 }
  0x84   :  { %vm145_vm2 = vcmp.eq.s32.totalorder %v138_v13, %v144_v14 }
  0xe1   :  { %v128_v15 = vpop.f32.mrf.mxu0 }
  0xe2   :  { %v322_v16 = vclamps-f32 %v128_v15, 1.0 }
  0xe3   :  { %v352_v17 = vpop.f32.mrf.mxu0 }
  0xe4   :  { %v146_v18 = vsel %vm145_vm2, %v322_v16, 0.0  ;;  %v166_v32 = vsel %vm165_vm6, %v322_v16, -1e+30 }
  0xe5   :  { %147 = vadd.xlane.f32.xlu0 %v146_v18  ;;  %v131_v19 = vpop.f32.mrf.mxu0 }
  0xe7   :  { %v353_v20 = vpop.f32.mrf.mxu0 }
 0x16e   :  { %v148_v21 = vpop.xlane.xlu0 %147 }
 0x16f   :  { %v323_v22 = vadd.f32 -0.4, %v148_v21 }
 0x171   :  { %v157_v24 = vmul.f32 64.0, %v323_v22  ;;  %v193_v25 = vsel %vm145_vm2, %v323_v22, %v322_v16 }
 0x172   :  { %v194_v26 = vmul.f32 64.0, %v193_v25 }
 0x173   :  { %v158_v27 = vsel %vm155_vm5, %v157_v24, 0.0 }
 0x174   :  { %v159_v28 = vadd.f32 %v158_v27, %v156_v23  ;;  %v195_v29 = vsel %vm165_vm6, %v194_v26, -1e+30 }
 0x175   :  { %198 = vmax.xlane.f32.xlu1 %v195_v29  ;;  %v196_v30 = vpack.c.bf16 %v195_v29, %v195_v29 }
 0x176   :  { %161 = vst.msk [vmem:[#allocation4] sm:$0xff] %vm23_vm1, %v159_v28 }
 0x177   :  { %197 = vst [vmem:[#allocation7] sm:$0xf] %v196_v30 }
 0x179   :  { %167 = vmax.xlane.f32.xlu1 %v166_v32 }
 0x1fe   :  { %v199_v34 = vpop.xlane.xlu1 %198 }
 0x1ff   :  { %v201_v35 = vmax.f32 %v200_v33, %v199_v34 }
 0x201   :  { %v202_v37 = vsub.f32 %v200_v33, %v201_v35  ;;  %219 = vst.msk [vmem:[#allocation2] sm:$0xff] %vm23_vm1, %v201_v35  ;;  %209 = vperm.xlu1 %360, %v201_v35  }
 0x202   :  { %v168_v38 = vpop.xlane.xlu1 %167 }
 0x203   :  { %v191_v39 = vmax.f32 %v185_v36, %v168_v38  ;;  %vm169_vm7 = vcmp.eq.f32.partialorder %v166_v32, %v168_v38 }
 0x204   :  { %v170_v40 = vsel %vm169_vm7, %v138_v13, 1073741824 }
 0x205   :  { %192 = vst.msk [vmem:[#allocation5] sm:$0xff] %vm23_vm1, %v191_v39  ;;  %v172_v41 = vshra.s32 %v170_v40, 16  ;;  %v171_v47 = vand.u32 65535, %v170_v40 }
 0x207   :  { %v174_v42 = vcvt.s32.f32 %v172_v41  ;;  %v173_v49 = vcvt.s32.f32 %v171_v47 }
 0x225   :  { %175 = vmin.xlane.f32.xlu1 %v174_v42 }
 0x27c   :  { %v210_v43 = vpop.permute.xlu1 %209 }
 0x27d   :  { %v212_v44 = vsub.f32 %v195_v29, %v210_v43 }
 0x27f   :  { %v213_v45 = vmul.f32 1.442695, %v212_v44 }
 0x281   :  { %369 = vpow2.f32 %v213_v45 }
 0x28e   :  { %v370_v46 = vpop.eup %369 }
 0x28f   :  { %215 = vadd.xlane.f32.xlu0 %v370_v46 }
 0x2ae   :  { %v176_v48 = vpop.xlane.xlu1 %175 }
 0x2af   :  { %vm177_vm8 = vcmp.eq.f32.partialorder %v174_v42, %v176_v48 }
 0x2b0   :  { %v178_v50 = vsel %vm177_vm8, %v173_v49, inf }
 0x2b1   :  { %179 = vmin.xlane.f32.xlu0 %v178_v50 }
 0x2b2   :  { %386 = shalt.err (!%p383_p4)
}
 0x2b3   :  { %301 = dma.vmem_to_hbm [thread:$0]  %s299_s1, 64, %s504_s3, [#allocation8]   ;;  %v203_v51 = vmul.f32 1.442695, %v202_v37  ;;  %v205_v53 = vld [vmem:[#allocation3] sm:$0xff]  ;;  %v279_v60 = vld [vmem:[#allocation2] sm:$0xff]  ;;  %v182_v0 = vcvt.f32.s32 %v176_v48  ;;  %vm186_vm9 = vcmp.gt.f32.partialorder %v168_v38, %v185_v36 }
 0x2b4   :  { %v284_v62 = vld [vmem:[#allocation4] sm:$0xff]  ;;  %v187_v6 = vld [vmem:[#allocation6] sm:$0xff] }
 0x2b5   :  { %371 = vpow2.f32 %v203_v51  ;;  %v183_v3 = vshll.u32 %v182_v0, 16 }
 0x2c2   :  { %v372_v52 = vpop.eup %371 }
 0x2c3   :  { %v206_v54 = vmul.f32 %v372_v52, %v205_v53 }
 0x318   :  { %v216_v55 = vpop.xlane.xlu0 %215 }
 0x319   :  { %v217_v56 = vadd.f32 %v216_v55, %v206_v54 }
 0x31b   :  { %218 = vst.msk [vmem:[#allocation3] sm:$0xff] %vm23_vm1, %v217_v56 }
 0x322   :  { %v280_v57 = vld [vmem:[#allocation3] sm:$0xff] }
 0x323   :  { %373 = vlog2.f32 %v280_v57 }
 0x330   :  { %v374_v58 = vpop.eup %373 }
 0x331   :  { %v282_v59 = vmul.f32 0.6931472, %v374_v58 }
 0x333   :  { %v283_v61 = vadd.f32 %v282_v59, %v279_v60 }
 0x335   :  { %v285_v63 = vsub.f32 %v283_v61, %v284_v62 }
 0x337   :  { %286 = vst.msk [vmem:[%s505_s4] sm:$0xff] %vm23_vm1, %v285_v63 }
 0x33a   :  { %v180_v2 = vpop.xlane.xlu0 %179 }
 0x33b   :  { %v181_v4 = vcvt.f32.s32 %v180_v2 }
 0x33d   :  { %v184_v7 = vadd.s32 %v183_v3, %v181_v4 }
 0x33f   :  { %v188_v8 = vsel %vm186_vm9, %v184_v7, %v187_v6 }
 0x340   :  { %189 = vst.msk [vmem:[#allocation6] sm:$0xff] %vm23_vm1, %v188_v8 }
 0x347   :  { %v287_v9 = vld [vmem:[#allocation6] sm:$0xff] }
 0x348   :  { %vm288_vm10 = vcmp.eq.s32.totalorder %v287_v9, %v453_v5 }
 0x349   :  { %v324_v10 = vsel %vm288_vm10, 1.0, %v397_v1 }
 0x34a   :  { %291 = vst.msk [vmem:[%s506_s5] sm:$0xff] %vm23_vm1, %v324_v10 }
 0x34b   :  { %395 = dma.done.wait [#allocation8], 64  }
 0x34c   :  { %396 = vsyncadd [#allocation8], 4294967232 }
 0x34d   :  { %313 = vsyncpa [#allocation8], 1 }

</bundles_post_ra>
